<compile_context>
chip_gen: v6e
topology: v6e:2x2x1
jax: 0.10.0
libtpu: 0.0.40
codegen_flags: <defaults>
</compile_context>

<pallas_src>
import jax
import jax.numpy as jnp
from jax.experimental import pallas as pl
from jax.experimental.pallas import tpu as pltpu


def _downsample_impl(x_nchw, weight, bias, *, compute_dtype=None):
    """Conv2d(in_ch, out_ch, 3, stride=2, padding=1), PyTorch semantics.

    x_nchw : (B, Cin, H, W)
    weight : (Cout, Cin, 3, 3)   (PyTorch OIHW)
    bias   : (Cout,)
    returns: (B, Cout, Ho, Wo)   with Ho = (H+1)//2, Wo = (W+1)//2
    """
    B, Cin, H, W = x_nchw.shape
    Cout = weight.shape[0]
    Ho = (H + 1) // 2
    Wo = (W + 1) // 2
    M = Ho * Wo
    C4 = 4 * Cin
    Hp = 2 * (Ho + 1)          # padded height (conv pad + space-to-depth halo row)
    Wp = 2 * (Wo + 1)

    dt_in = x_nchw.dtype
    if compute_dtype is None:
        # bf16 MXU inputs (with f32 accumulation) are the fast, safe default on v5e/v6e/v7x.
        cdt = jnp.bfloat16 if dt_in == jnp.float32 else dt_in
    else:
        cdt = compute_dtype

    # ---- glue: ONE fused layout pass -> space-to-depth NHWC input -----------------------
    # xs[b, i, j, (2*ph + pw)*Cin + c] = x_padded[b, 2*i + ph, 2*j + pw, c]
    x = jnp.transpose(x_nchw, (0, 2, 3, 1)).astype(cdt)                    # (B, H, W, Cin)
    x = jnp.pad(x, ((0, 0), (1, Hp - H - 1), (1, Wp - W - 1), (0, 0)))     # (B, Hp, Wp, Cin)
    xs = (x.reshape(B, Ho + 1, 2, Wo + 1, 2, Cin)
            .transpose(0, 1, 3, 2, 4, 5)
            .reshape(B, Ho + 1, Wo + 1, C4))

    # ---- weights: OIHW -> 2x2 "super-tap" form (4, 4*Cin, Cout) -------------------------
    # Tap (a, b) of the 2x2 conv uses original weights (kh, kw) = (2a+ph, 2b+pw);
    # kh == 3 / kw == 3 rows are structurally zero (added by the pad below).
    wt = jnp.transpose(weight, (2, 3, 1, 0))                               # (3, 3, Cin, Cout)
    wt = jnp.pad(wt, ((0, 1), (0, 1), (0, 0), (0, 0)))                     # (4, 4, Cin, Cout)
    w2 = (wt.reshape(2, 2, 2, 2, Cin, Cout)                                # (a, ph, b, pw, ci, co)
            .transpose(0, 2, 1, 3, 4, 5)                                   # (a, b, ph, pw, ci, co)
            .reshape(4, C4, Cout)
            .astype(cdt))
    b2 = bias.astype(jnp.float32).reshape(1, Cout)

    taps = ((0, 0), (0, 1), (1, 0), (1, 1))
    single_dot = C4 < 128      # small Cin: one K = 16*Cin matmul; else 4 dots with K = 4*Cin

    if single_dot:
        w_arg = w2.reshape(4 * C4, Cout)
        w_spec = pl.BlockSpec((4 * C4, Cout), lambda i: (0, 0))

        def kernel(xs_ref, w_ref, b_ref, o_ref):
            # Build one (M, 16*Cin) patch in VMEM and issue a single MXU matmul.
            patch = jnp.concatenate(
                [xs_ref[0, a:a + Ho, c:c + Wo, :] for a, c in taps],
                axis=-1).reshape(M, 4 * C4)
            acc = jnp.dot(patch, w_ref[...],
                          preferred_element_type=jnp.float32) + b_ref[...]
            o_ref[0] = acc.astype(o_ref.dtype)
    else:
        w_arg = w2
        w_spec = pl.BlockSpec((4, C4, Cout), lambda i: (0, 0, 0))

        def kernel(xs_ref, w_ref, b_ref, o_ref):
            # 4 dots with K = 4*Cin >= 128: MXU depth is filled, only 3 accumulation passes.
            acc = jnp.broadcast_to(b_ref[...], (M, Cout))
            for p, (a, c) in enumerate(taps):
                tap = xs_ref[0, a:a + Ho, c:c + Wo, :].reshape(M, C4)
                acc = acc + jnp.dot(tap, w_ref[p],
                                    preferred_element_type=jnp.float32)
            o_ref[0] = acc.astype(o_ref.dtype)

    # VMEM budget from actual block sizes (covers double-buffering + in-kernel temporaries).
    csize = jnp.dtype(cdt).itemsize
    blk_bytes = ((Ho + 1) * (Wo + 1) * C4 * csize          # xs block
                 + 4 * C4 * Cout * csize                   # weights
                 + Cout * 4                                # bias
                 + M * Cout * jnp.dtype(dt_in).itemsize)   # output block
    vmem_limit = int(min(64 * 1024 * 1024, max(16 * 1024 * 1024, 6 * blk_bytes)))

    out = pl.pallas_call(
        kernel,
        out_shape=jax.ShapeDtypeStruct((B, M, Cout), dt_in),   # unpadded: exact HBM bytes
        grid_spec=pltpu.PrefetchScalarGridSpec(
            num_scalar_prefetch=0,
            grid=(B,),
            in_specs=[
                pl.BlockSpec((1, Ho + 1, Wo + 1, C4), lambda i: (i, 0, 0, 0)),
                w_spec,                                         # constant -> fetched once
                pl.BlockSpec((1, Cout), lambda i: (0, 0)),      # constant -> fetched once
            ],
            out_specs=pl.BlockSpec((1, M, Cout), lambda i: (i, 0, 0)),
        ),
        compiler_params=pltpu.CompilerParams(
            dimension_semantics=("parallel",),                  # batch axis -> megacore split
            vmem_limit_bytes=vmem_limit,
        ),
    )(xs, w_arg, b2)

    out = out.reshape(B, Ho, Wo, Cout)                 # metadata-only reshape
    return jnp.transpose(out, (0, 3, 1, 2))            # back to NCHW (PyTorch layout)


downsample_pallas = jax.jit(_downsample_impl, static_argnames=("compute_dtype",))


if __name__ == "__main__":
    key = jax.random.PRNGKey(0)
    kx, kw_, kb = jax.random.split(key, 3)

    B, Cin, Cout, H, W = 2, 4, 8, 16, 16
    x = jax.random.normal(kx, (B, Cin, H, W), dtype=jnp.float32)

    # deterministic parameter init for nn.Conv2d(4, 8, 3, stride=2, padding=1)
    fan_in = Cin * 3 * 3
    bound = 1.0 / (fan_in ** 0.5)
    weight = jax.random.uniform(kw_, (Cout, Cin, 3, 3), jnp.float32, -bound, bound)
    bias = jax.random.uniform(kb, (Cout,), jnp.float32, -bound, bound)

    # reference: XLA conv
    y_ref = jax.lax.conv_general_dilated(
        x, weight, window_strides=(2, 2), padding=((1, 1), (1, 1)),
        dimension_numbers=("NCHW", "OIHW", "NCHW"),
    ) + bias.reshape(1, Cout, 1, 1)

    # default path: bf16 MXU inputs, f32 accumulation (loosened tolerance)
    y = jax.block_until_ready(downsample_pallas(x, weight, bias))
    assert y.shape == (B, Cout, (H + 1) // 2, (W + 1) // 2), y.shape
    assert jnp.allclose(y, y_ref, atol=5e-2, rtol=5e-2)

    # exact f32 compute path: tight tolerance
    y32 = jax.block_until_ready(
        downsample_pallas(x, weight, bias, compute_dtype=jnp.float32))
    assert y32.shape == y_ref.shape
    assert jnp.allclose(y32, y_ref, atol=1e-5, rtol=1e-5)

    print("KERNEL_OK")
</pallas_src>

<mosaic_0001>
module attributes {stable_mosaic.version = 11 : i64} {
  func.func @kernel(%arg0: i32, %arg1: memref<1x9x9x16xbf16, #tpu.memory_space<vmem>>, %arg2: memref<64x8xbf16, #tpu.memory_space<vmem>>, %arg3: memref<1x8xf32, #tpu.memory_space<vmem>>, %arg4: memref<1x64x8xf32, #tpu.memory_space<vmem>>) attributes {dimension_semantics = [#tpu.dimension_semantics<parallel>], iteration_bounds = array<i64: 2>, scalar_prefetch = 0 : i64, scratch_operands = 0 : i64, tpu.core_type = #tpu.core_type<tc>, window_params = [{transform_indices = @transform_0, window_bounds = array<i64: 1, 9, 9, 16>}, {pipeline_mode = #tpu.pipeline_mode<synchronous>, transform_indices = @transform_1, window_bounds = array<i64: 64, 8>}, {pipeline_mode = #tpu.pipeline_mode<synchronous>, transform_indices = @transform_2, window_bounds = array<i64: 1, 8>}, {transform_indices = @transform_3, window_bounds = array<i64: 1, 64, 8>}]} {
    %c0 = arith.constant 0 : index
    %c0_0 = arith.constant 0 : index
    %c0_1 = arith.constant 0 : index
    %c0_2 = arith.constant 0 : index
    %0 = vector.load %arg1[%c0, %c0_0, %c0_1, %c0_2] : memref<1x9x9x16xbf16, #tpu.memory_space<vmem>>, vector<1x8x8x16xbf16>
    %1 = vector.shape_cast %0 : vector<1x8x8x16xbf16> to vector<8x8x16xbf16>
    %c0_3 = arith.constant 0 : index
    %c0_4 = arith.constant 0 : index
    %c1 = arith.constant 1 : index
    %c0_5 = arith.constant 0 : index
    %2 = vector.load %arg1[%c0_3, %c0_4, %c1, %c0_5] : memref<1x9x9x16xbf16, #tpu.memory_space<vmem>>, vector<1x8x8x16xbf16>
    %3 = vector.shape_cast %2 : vector<1x8x8x16xbf16> to vector<8x8x16xbf16>
    %c0_6 = arith.constant 0 : index
    %c1_7 = arith.constant 1 : index
    %c0_8 = arith.constant 0 : index
    %c0_9 = arith.constant 0 : index
    %4 = vector.load %arg1[%c0_6, %c1_7, %c0_8, %c0_9] : memref<1x9x9x16xbf16, #tpu.memory_space<vmem>>, vector<1x8x8x16xbf16>
    %5 = vector.shape_cast %4 : vector<1x8x8x16xbf16> to vector<8x8x16xbf16>
    %c0_10 = arith.constant 0 : index
    %c1_11 = arith.constant 1 : index
    %c1_12 = arith.constant 1 : index
    %c0_13 = arith.constant 0 : index
    %6 = vector.load %arg1[%c0_10, %c1_11, %c1_12, %c0_13] : memref<1x9x9x16xbf16, #tpu.memory_space<vmem>>, vector<1x8x8x16xbf16>
    %7 = vector.shape_cast %6 : vector<1x8x8x16xbf16> to vector<8x8x16xbf16>
    %8 = tpu.concatenate %1, %3, %5, %7 in 2 : vector<8x8x16xbf16>, vector<8x8x16xbf16>, vector<8x8x16xbf16>, vector<8x8x16xbf16> -> vector<8x8x64xbf16>
    %9 = vector.shape_cast %8 : vector<8x8x64xbf16> to vector<64x64xbf16>
    %c0_14 = arith.constant 0 : index
    %c0_15 = arith.constant 0 : index
    %10 = vector.load %arg2[%c0_14, %c0_15] : memref<64x8xbf16, #tpu.memory_space<vmem>>, vector<64x8xbf16>
    %cst = arith.constant dense<0.000000e+00> : vector<64x8xf32>
    %11 = tpu.matmul %9, %10, %cst {dimension_numbers = #tpu.dot_dimension_numbers<[1], [0], [0], [1], [0, 0, 1, 1], [], []>} : vector<64x64xbf16>, vector<64x8xbf16>, vector<64x8xf32> -> vector<64x8xf32>
    %c0_16 = arith.constant 0 : index
    %c0_17 = arith.constant 0 : index
    %12 = vector.load %arg3[%c0_16, %c0_17] : memref<1x8xf32, #tpu.memory_space<vmem>>, vector<1x8xf32>
    %13 = vector.broadcast %12 : vector<1x8xf32> to vector<64x8xf32>
    %14 = arith.addf %11, %13 : vector<64x8xf32>
    %c0_18 = arith.constant 0 : index
    %c0_19 = arith.constant 0 : index
    %c0_20 = arith.constant 0 : index
    %15 = vector.load %arg4[%c0_18, %c0_19, %c0_20] : memref<1x64x8xf32, #tpu.memory_space<vmem>>, vector<1x64x8xf32>
    %16 = vector.shape_cast %15 : vector<1x64x8xf32> to vector<64x8xf32>
    %17 = vector.shape_cast %14 : vector<64x8xf32> to vector<1x64x8xf32>
    tpu.vector_store %arg4[%c0_18, %c0_19, %c0_20], %17 {strides = array<i32>} : memref<1x64x8xf32, #tpu.memory_space<vmem>>, vector<1x64x8xf32>,
    return
  }
  func.func @transform_0(%arg0: i32) -> (i32, i32, i32, i32) {
    %c0_i32 = arith.constant 0 : i32
    %c0_i32_0 = arith.constant 0 : i32
    %c0_i32_1 = arith.constant 0 : i32
    %c0_i32_2 = arith.constant 0 : i32
    return %arg0, %c0_i32, %c0_i32_0, %c0_i32_1 : i32, i32, i32, i32
  }
  func.func @transform_1(%arg0: i32) -> (i32, i32) {
    %c0_i32 = arith.constant 0 : i32
    %c0_i32_0 = arith.constant 0 : i32
    %c0_i32_1 = arith.constant 0 : i32
    return %c0_i32, %c0_i32_0 : i32, i32
  }
  func.func @transform_2(%arg0: i32) -> (i32, i32) {
    %c0_i32 = arith.constant 0 : i32
    %c0_i32_0 = arith.constant 0 : i32
    %c0_i32_1 = arith.constant 0 : i32
    return %c0_i32, %c0_i32_0 : i32, i32
  }
  func.func @transform_3(%arg0: i32) -> (i32, i32, i32) {
    %c0_i32 = arith.constant 0 : i32
    %c0_i32_0 = arith.constant 0 : i32
    %c0_i32_1 = arith.constant 0 : i32
    return %arg0, %c0_i32, %c0_i32_0 : i32, i32, i32
  }
}

</mosaic_0001>

<bundles_post_ra>
// kernel: _downsample_impl.1
= control target key start
LH: loop header
LB: loop body
LE: loop exit
PB: predicated region body
PF: predicated region fallthrough
CT: control target
= control target key end

     0   :  { %s880_s12 = smov 0   ;;  %s1044_s0 = inlined_call_operand.vmem [shape: bf16[2,9,9,16], index: 0, kind: input, shape index: {}]   ;;  %s1045_s1 = inlined_call_operand.vmem [shape: bf16[64,8], index: 1, kind: input, shape index: {}]   ;;  %s1046_s2 = inlined_call_operand.vmem [shape: f32[1,8], index: 2, kind: input, shape index: {}]   ;;  %s1047_s3 = inlined_call_operand.vmem [shape: f32[2,64,8], index: 3, kind: output, shape index: {}]  }
   0x1 LB: > { %s713_s13 = sadd.s32 4294967295, %s855_s12   ;;  %p717_p0 = scmp.ge.s32.totalorder %s855_s12, 1  ;;  %s855_s12 = sphi %s880_s12, %s13_s12  }
   0x2   : > { %p137_p1 = scmp.lt.s32.totalorder %s855_s12, 3 }
   0x4   : > { %p138_p2 = pnand %p717_p0, %p137_p1 }
   0x5   : > { %p161_p3 = scmp.lt.s32.totalorder (!%p138_p2), %s713_s13, 1  ;;  %s857_s18 = smov (!%p138_p2), 32  }
   0x6   : > { %141 = sbr.rel (%p138_p2) target bundleno = 386 (0x182), region = 32  ;;  %s858_s19 = smov (!%p138_p2), 16  }
   0x7   : > { %s859_s28 = smov (!%p138_p2), 48  }
   0xb   : > { %s1049_s13 = smov (!%p161_p3, %s713_s13), 1  ;;  %v845_v60 = vld [vmem:[%s1045_s1 + $0x18] sm:$0xff]   ;;  %vm453_vm0 = vcmask 130048   ;;  %vm478_vm1 = vcmask 261120   ;;  %vm495_vm2 = vcmask 392192   ;;  %vm571_vm3 = vcmask 523264  }
   0xc   : > { %s809_s14 = smul.u32 72, %s1049_s13  ;;  %785 = vmatprep.subr.bf16.mxu0 %v845_v60  ;;  %801 = vmatprep.subr.bf16.mxu1 %v845_v60  ;;  %s776_s29 = sshll.u32 %s1049_s13, 6  ;;  %vm649_vm4 = vcmask 64512  }
   0xd   : > { %786 = vmatpush3.bf16.msra.mxu0 %v845_v60  ;;  %805 = vmatpush3.bf16.msra.mxu1 %v845_v60  ;;  %s170_s7 = scalar_lea.vmem %s1047_s3, %s776_s29 }
   0xe   : > { %s894_s17 = scalar_lea.vmem %s1044_s0, %s809_s14 }
   0xf   : > { %v897_v0 = vld [vmem:[%s894_s17 + $0x10] sm:$0xf]  ;;  %v900_v1 = vld [vmem:[%s894_s17 + $0x8] sm:$0xf]  ;;  %v907_v4 = vld [vmem:[%s894_s17 + $0x20] sm:$0xf] }
  0x10   : > { %v746_v2 = vcombine.low %v897_v0, %v897_v0  ;;  %v745_v3 = vcombine.low %v900_v1, %v900_v1  ;;  %v184_v5 = vld [vmem:[%s894_s17 + $0x24] sm:$0x1]  ;;  %v912_v7 = vld [vmem:[%s894_s17] sm:$0xf]  ;;  %v916_v9 = vld [vmem:[%s894_s17 + $0x28] sm:$0xf] }
  0x11   : > { %v741_v6 = vcombine.low %v907_v4, %v184_v5  ;;  %v180_v8 = vld [vmem:[%s894_s17 + $0x4] sm:$0x1]  ;;  %v185_v11 = vld [vmem:[%s894_s17 + $0x2c] sm:$0x1]  ;;  %v923_v12 = vld [vmem:[%s894_s17 + $0x8] sm:$0xf] }
  0x12   : > { %343 = vrot.lane.b32.xlu1 %v746_v2, %s857_s18  ;;  %341 = vrot.lane.b32.xlu0 %v745_v3, %s857_s18  ;;  %v737_v10 = vcombine.low %v912_v7, %v180_v8  ;;  %v181_v15 = vld [vmem:[%s894_s17 + $0xc] sm:$0x1]  ;;  %v742_v18 = vcombine.low %v916_v9, %v185_v11  ;;  %v929_v20 = vld [vmem:[%s894_s17 + $0x18] sm:$0xf] }
  0x13   : > { %v274_v13 = vshrl.u32 %v741_v6, 16  ;;  %v276_v14 = vshll.u32 %v741_v6, 16  ;;  %v738_v19 = vcombine.low %v923_v12, %v181_v15  ;;  %v183_v21 = vld [vmem:[%s894_s17 + $0x1c] sm:$0x1]  ;;  %v934_v24 = vld [vmem:[%s894_s17 + $0x10] sm:$0xf] }
  0x14   : > { %v246_v16 = vshrl.u32 %v737_v10, 16  ;;  %v248_v17 = vshll.u32 %v737_v10, 16  ;;  %v740_v23 = vcombine.low %v929_v20, %v183_v21  ;;  %v182_v25 = vld [vmem:[%s894_s17 + $0x14] sm:$0x1]  ;;  %v281_v27 = vshrl.u32 %v742_v18, 16 }
  0x15   : > { %v278_v22 = vrot.slane %v276_v14, 1  ;;  %v283_v28 = vshll.u32 %v742_v18, 16  ;;  %v938_v29 = vld [vmem:[%s894_s17 + $0x38] sm:$0xf]  ;;  %v253_v31 = vshrl.u32 %v738_v19, 16  ;;  %v255_v32 = vshll.u32 %v738_v19, 16 }
  0x16   : > { %v250_v26 = vrot.slane %v248_v17, 1  ;;  %v269_v33 = vshll.u32 %v740_v23, 16  ;;  %v187_v34 = vld [vmem:[%s894_s17 + $0x3c] sm:$0x1]  ;;  %v739_v37 = vcombine.low %v934_v24, %v182_v25  ;;  %v944_v39 = vld [vmem:[%s894_s17 + $0x30] sm:$0xf] }
  0x17   : > { %v279_v30 = vor.u32 %v278_v22, %v274_v13  ;;  %v285_v36 = vrot.slane %v283_v28, 1  ;;  %v744_v38 = vcombine.low %v938_v29, %v187_v34  ;;  %v186_v40 = vld [vmem:[%s894_s17 + $0x34] sm:$0x1]  ;;  %v257_v41 = vrot.slane %v255_v32, 1  ;;  %v726_v62 = vld [vmem:[%s894_s17 + $0x30] sm:$0xf] }
  0x18   : > { %v251_v35 = vor.u32 %v250_v26, %v246_v16  ;;  %v267_v42 = vshrl.u32 %v740_v23, 16  ;;  %v271_v43 = vrot.slane %v269_v33, 1  ;;  %v743_v44 = vcombine.low %v944_v39, %v186_v40  ;;  %v730_v58 = vld [vmem:[%s894_s17 + $0x14] sm:$0x1]  ;;  %v729_v63 = vld [vmem:[%s894_s17 + $0xc] sm:$0x1] }
  0x19   : > { %309 = vrot.lane.b32.xlu1 %v279_v30, %s858_s19  ;;  %v286_v45 = vor.u32 %v285_v36, %v281_v27  ;;  %v260_v46 = vshrl.u32 %v739_v37, 16  ;;  %v262_v47 = vshll.u32 %v739_v37, 16  ;;  %v258_v48 = vor.u32 %v257_v41, %v253_v31  ;;  %v725_v2 = vld [vmem:[%s894_s17 + $0x28] sm:$0xf]  ;;  %v846_v6 = vld [vmem:[%s1045_s1 + $0x10] sm:$0xff]  }
  0x1a   : > { %301 = vrot.lane.b32.xlu0 %v251_v35, %s858_s19  ;;  %v297_v49 = vshll.u32 %v744_v38, 16  ;;  %v290_v51 = vshll.u32 %v743_v44, 16  ;;  %v272_v52 = vor.u32 %v271_v43, %v267_v42  ;;  %v295_v53 = vshrl.u32 %v744_v38, 16  ;;  %v734_v10 = vld [vmem:[%s894_s17 + $0x34] sm:$0x1]  ;;  %787 = vmatprep.subr.bf16.mxu0 %v846_v6  ;;  %v847_v17 = vld [vmem:[%s1045_s1 + $0x8] sm:$0xff]  }
  0x1b   : > { %v264_v50 = vrot.slane %v262_v47, 1  ;;  %v288_v56 = vshrl.u32 %v743_v44, 16  ;;  %v754_v3 = vcombine.low %v897_v0, %v730_v58  ;;  %v750_v5 = vcombine.low %v726_v62, %v726_v62  ;;  %v724_v13 = vld [vmem:[%s894_s17 + $0x20] sm:$0xf]  ;;  %v733_v14 = vld [vmem:[%s894_s17 + $0x2c] sm:$0x1]  ;;  %802 = vmatprep.subr.bf16.mxu1 %v846_v6  ;;  %788 = vmatpush3.bf16.msra.mxu0 %v846_v6 }
  0x1c   : > { %v299_v54 = vrot.slane %v297_v49, 1  ;;  %v292_v57 = vrot.slane %v290_v51, 1  ;;  %v753_v8 = vcombine.low %v900_v1, %v729_v63  ;;  %v749_v11 = vcombine.low %v725_v2, %v725_v2  ;;  %v723_v0 = vld [vmem:[%s894_s17 + $0x18] sm:$0xf]  ;;  %806 = vmatpush3.bf16.msra.mxu1 %v846_v6  ;;  %v732_v21 = vld [vmem:[%s894_s17 + $0x24] sm:$0x1]  ;;  %789 = vmatprep.subr.bf16.mxu0 %v847_v17 }
  0x1d   : > { %311 = vrot.lane.b32.xlu1 %v286_v45, %s858_s19  ;;  %v265_v55 = vor.u32 %v264_v50, %v260_v46  ;;  %v391_v15 = vshll.u32 %v754_v3, 16  ;;  %v758_v16 = vcombine.low %v726_v62, %v734_v10  ;;  %v748_v1 = vcombine.low %v724_v13, %v724_v13  ;;  %v728_v23 = vld [vmem:[%s894_s17 + $0x40] sm:$0xf]  ;;  %v731_v25 = vld [vmem:[%s894_s17 + $0x1c] sm:$0x1]  ;;  %803 = vmatprep.subr.bf16.mxu1 %v847_v17 }
  0x1e   : > { %303 = vrot.lane.b32.xlu0 %v258_v48, %s858_s19  ;;  %v300_v59 = vor.u32 %v299_v54, %v295_v53  ;;  %v293_v61 = vor.u32 %v292_v57, %v288_v56  ;;  %v384_v18 = vshll.u32 %v753_v8, 16  ;;  %v757_v19 = vcombine.low %v725_v2, %v733_v14  ;;  %v727_v26 = vld [vmem:[%s894_s17 + $0x38] sm:$0xf]  ;;  %v736_v32 = vld [vmem:[%s894_s17 + $0x44] sm:$0x1] }
  0x1f   : > { %v747_v22 = vcombine.low %v723_v0, %v723_v0  ;;  %v389_v27 = vshrl.u32 %v754_v3, 16  ;;  %v393_v28 = vrot.slane %v391_v15, 1  ;;  %790 = vmatpush3.bf16.msra.mxu0 %v847_v17  ;;  %v382_v30 = vshrl.u32 %v753_v8, 16  ;;  %v848_v35 = vld [vmem:[%s1045_s1] sm:$0xff]   ;;  %v735_v37 = vld [vmem:[%s894_s17 + $0x3c] sm:$0x1] }
  0x20   : > { %807 = vmatpush3.bf16.msra.mxu1 %v847_v17  ;;  %v756_v31 = vcombine.low %v724_v13, %v732_v21  ;;  %v752_v33 = vcombine.low %v728_v23, %v728_v23  ;;  %v419_v34 = vshll.u32 %v758_v16, 16  ;;  %v755_v36 = vcombine.low %v723_v0, %v731_v25  ;;  %791 = vmatprep.subr.bf16.mxu0 %v848_v35 }
  0x21   : > { %307 = vrot.lane.b32.xlu1 %v272_v52, %s858_s19  ;;  %v751_v38 = vcombine.low %v727_v26, %v727_v26  ;;  %v386_v40 = vrot.slane %v384_v18, 1  ;;  %v412_v41 = vshll.u32 %v757_v19, 16  ;;  %804 = vmatprep.subr.bf16.mxu1 %v848_v35  ;;  %v760_v42 = vcombine.low %v728_v23, %v736_v32 }
  0x22   : > { %305 = vrot.lane.b32.xlu0 %v265_v55, %s858_s19  ;;  %v394_v43 = vor.u32 %v393_v28, %v389_v27  ;;  %v759_v44 = vcombine.low %v727_v26, %v735_v37  ;;  %v417_v45 = vshrl.u32 %v758_v16, 16  ;;  %v421_v46 = vrot.slane %v419_v34, 1 }
  0x23   : > { %792 = vmatpush3.bf16.msra.mxu0 %v848_v35  ;;  %v405_v47 = vshll.u32 %v756_v31, 16  ;;  %v387_v48 = vor.u32 %v386_v40, %v382_v30  ;;  %v410_v49 = vshrl.u32 %v757_v19, 16  ;;  %v414_v50 = vrot.slane %v412_v41, 1 }
  0x24   : > { %808 = vmatpush3.bf16.msra.mxu1 %v848_v35  ;;  %v398_v51 = vshll.u32 %v755_v36, 16  ;;  %v422_v52 = vor.u32 %v421_v46, %v417_v45  ;;  %v403_v53 = vshrl.u32 %v756_v31, 16  ;;  %v433_v55 = vshll.u32 %v760_v42, 16 }
  0x25   : > { %315 = vrot.lane.b32.xlu1 %v300_v59, %s858_s19  ;;  %v407_v54 = vrot.slane %v405_v47, 1  ;;  %v415_v56 = vor.u32 %v414_v50, %v410_v49  ;;  %v396_v57 = vshrl.u32 %v755_v36, 16  ;;  %v426_v59 = vshll.u32 %v759_v44, 16 }
  0x26   : > { %313 = vrot.lane.b32.xlu0 %v293_v61, %s858_s19  ;;  %v400_v58 = vrot.slane %v398_v51, 1  ;;  %v431_v61 = vshrl.u32 %v760_v42, 16  ;;  %v435_v62 = vrot.slane %v433_v55, 1  ;;  %v424_v2 = vshrl.u32 %v759_v44, 16 }
  0x27   : > { %v408_v60 = vor.u32 %v407_v54, %v403_v53  ;;  %v428_v3 = vrot.slane %v426_v59, 1 }
  0x28   : > { %v401_v63 = vor.u32 %v400_v58, %v396_v57 }
  0x29   : > { %351 = vrot.lane.b32.xlu1 %v750_v5, %s857_s18  ;;  %v436_v5 = vor.u32 %v435_v62, %v431_v61  ;;  %v429_v6 = vor.u32 %v428_v3, %v424_v2 }
  0x2a   : > { %349 = vrot.lane.b32.xlu0 %v749_v11, %s857_s18 }
  0x2d   : > { %347 = vrot.lane.b32.xlu1 %v748_v1, %s857_s18 }
  0x2e   : > { %345 = vrot.lane.b32.xlu0 %v747_v22, %s857_s18 }
  0x31   : > { %355 = vrot.lane.b32.xlu1 %v752_v33, %s857_s18 }
  0x32   : > { %353 = vrot.lane.b32.xlu0 %v751_v38, %s857_s18 }
  0x35   : > { %439 = vrot.lane.b32.xlu1 %v394_v43, %s859_s28 }
  0x36   : > { %437 = vrot.lane.b32.xlu0 %v387_v48, %s859_s28 }
  0x39   : > { %447 = vrot.lane.b32.xlu1 %v422_v52, %s859_s28 }
  0x3a   : > { %445 = vrot.lane.b32.xlu0 %v415_v56, %s859_s28 }
  0x3d   : > { %443 = vrot.lane.b32.xlu1 %v408_v60, %s859_s28 }
  0x3e   : > { %441 = vrot.lane.b32.xlu0 %v401_v63, %s859_s28 }
  0x41   : > { %451 = vrot.lane.b32.xlu1 %v436_v5, %s859_s28 }
  0x42   : > { %449 = vrot.lane.b32.xlu0 %v429_v6, %s859_s28 }
  0x84   : > { %v344_v8 = vpop.permute.xlu1 %343  ;;  %v342_v10 = vpop.permute.xlu0 %341 }
  0x8b   : > { %v310_v11 = vpop.permute.xlu1 %309 }
  0x8c   : > { %v302_v13 = vpop.permute.xlu0 %301 }
  0x8d   : > { %v456_v27 = vsel %vm453_vm0, %v912_v7, %v302_v13  ;;  %v468_v7 = vsel %vm453_vm0, %v907_v4, %v310_v11 }
  0x8e   : > { %v480_v32 = vsel %vm478_vm1, %v456_v27, %v342_v10 }
  0x8f   : > { %v312_v14 = vpop.permute.xlu1 %311 }
  0x90   : > { %v304_v0 = vpop.permute.xlu0 %303 }
  0x91   : > { %v459_v25 = vsel %vm453_vm0, %v923_v12, %v304_v0  ;;  %v471_v12 = vsel %vm453_vm0, %v916_v9, %v312_v14 }
  0x92   : > { %v482_v30 = vsel %vm478_vm1, %v459_v25, %v344_v8 }
  0x93   : > { %v308_v15 = vpop.permute.xlu1 %307 }
  0x94   : > { %v306_v16 = vpop.permute.xlu0 %305  ;;  %v465_v43 = vsel %vm453_vm0, %v929_v20, %v308_v15 }
  0x95   : > { %v462_v44 = vsel %vm453_vm0, %v934_v24, %v306_v16 }
  0x97   : > { %v316_v1 = vpop.permute.xlu1 %315 }
  0x98   : > { %v314_v17 = vpop.permute.xlu0 %313  ;;  %v477_v20 = vsel %vm453_vm0, %v938_v29, %v316_v1  ;;  %v761_v29 = vld [vmem:[%s1046_s2] ss:$0 sm:$0xff] }
  0x99   : > { %v474_v24 = vsel %vm453_vm0, %v944_v39, %v314_v17 }
  0x9b   : > { %v352_v18 = vpop.permute.xlu1 %351 }
  0x9c   : > { %v350_v19 = vpop.permute.xlu0 %349  ;;  %v490_v36 = vsel %vm478_vm1, %v471_v12, %v352_v18 }
  0x9d   : > { %v488_v38 = vsel %vm478_vm1, %v468_v7, %v350_v19 }
  0x9f   : > { %v348_v21 = vpop.permute.xlu1 %347 }
  0xa0   : > { %v346_v22 = vpop.permute.xlu0 %345  ;;  %v486_v4 = vsel %vm478_vm1, %v465_v43, %v348_v21 }
  0xa1   : > { %v484_v46 = vsel %vm478_vm1, %v462_v44, %v346_v22 }
  0xa3   : > { %v356_v23 = vpop.permute.xlu1 %355 }
  0xa4   : > { %v354_v26 = vpop.permute.xlu0 %353  ;;  %v494_v51 = vsel %vm478_vm1, %v477_v20, %v356_v23 }
  0xa5   : > { %v492_v53 = vsel %vm478_vm1, %v474_v24, %v354_v26 }
  0xa7   : > { %v440_v28 = vpop.permute.xlu1 %439 }
  0xa8   : > { %v499_v31 = vsel %vm495_vm2, %v482_v30, %v440_v28  ;;  %v438_v33 = vpop.permute.xlu0 %437 }
  0xa9   : > { %v497_v34 = vsel %vm495_vm2, %v480_v32, %v438_v33 }
  0xaa   : > { %v762_v35 = vcombine.low %v497_v34, %v499_v31 }
  0xab   : > { %v448_v37 = vpop.permute.xlu1 %447 }
  0xac   : > { %v507_v40 = vsel %vm495_vm2, %v490_v36, %v448_v37  ;;  %793 = vmatprep.mubr.msk.bf16.mxu0 %vm571_vm3, %v762_v35  ;;  %v446_v41 = vpop.permute.xlu0 %445 }
  0xad   : > { %v505_v42 = vsel %vm495_vm2, %v488_v38, %v446_v41 }
  0xae   : > { %v764_v9 = vcombine.low %v505_v42, %v507_v40 }
  0xaf   : > { %v444_v45 = vpop.permute.xlu1 %443 }
  0xb0   : > { %v503_v47 = vsel %vm495_vm2, %v486_v4, %v444_v45  ;;  %797 = vmatprep.mubr.msk.bf16.mxu1 %vm571_vm3, %v764_v9  ;;  %v442_v48 = vpop.permute.xlu0 %441 }
  0xb1   : > { %v501_v49 = vsel %vm495_vm2, %v484_v46, %v442_v48 }
  0xb2   : > { %v763_v50 = vcombine.low %v501_v49, %v503_v47 }
  0xb3   : > { %v452_v52 = vpop.permute.xlu1 %451 }
  0xb4   : > { %v511_v54 = vsel %vm495_vm2, %v494_v51, %v452_v52  ;;  %794 = vmatmul.mubr.msk.bf16.vlgmr.msra.gmra.mxu0 %vm571_vm3, %v763_v50  ;;  %v450_v55 = vpop.permute.xlu0 %449 }
  0xb5   : > { %v509_v56 = vsel %vm495_vm2, %v492_v53, %v450_v55 }
  0xb6   : > { %v765_v57 = vcombine.low %v509_v56, %v511_v54 }
  0xb8   : > { %798 = vmatmul.mubr.msk.bf16.vlgmr.msra.gmra.mxu1 %vm571_vm3, %v765_v57 }
 0x174   : > { %v795_v39 = vpop.f32.mrf.mxu0 }
 0x175   : > { %v627_v58 = vadd.f32 %v795_v39, %v761_v29 }
 0x176   : > { %v618_v59 = vpop.f32.mrf.mxu0 }
 0x177   : > { %652 = vst.msk [vmem:[%s170_s7 + $0x10] sm:$0xff] %vm649_vm4, %v627_v58  ;;  %v619_v60 = vadd.f32 %v761_v29, %v618_v59 }
 0x178   : > { %v796_v61 = vpop.f32.mrf.mxu0  ;;  %v799_v62 = vpop.f32.mrf.mxu1 }
 0x179   : > { %650 = vst.msk [vmem:[%s170_s7] sm:$0xff] %vm649_vm4, %v619_v60  ;;  %v630_v63 = vadd.f32 %v796_v61, %v761_v29  ;;  %v643_v2 = vadd.f32 %v799_v62, %v761_v29 }
 0x17a   : > { %v621_v3 = vpop.f32.mrf.mxu0  ;;  %v634_v5 = vpop.f32.mrf.mxu1 }
 0x17b   : > { %653 = vst.msk [vmem:[%s170_s7 + $0x18] sm:$0xff] %vm649_vm4, %v630_v63  ;;  %656 = vst.msk [vmem:[%s170_s7 + $0x30] sm:$0xff] %vm649_vm4, %v643_v2  ;;  %v622_v6 = vadd.f32 %v761_v29, %v621_v3  ;;  %v635_v8 = vadd.f32 %v761_v29, %v634_v5 }
 0x17c   : > { %v800_v10 = vpop.f32.mrf.mxu1 }
 0x17d   : > { %651 = vst.msk [vmem:[%s170_s7 + $0x8] sm:$0xff] %vm649_vm4, %v622_v6  ;;  %654 = vst.msk [vmem:[%s170_s7 + $0x20] sm:$0xff] %vm649_vm4, %v635_v8  ;;  %v646_v11 = vadd.f32 %v800_v10, %v761_v29 }
 0x17e   : > { %v637_v13 = vpop.f32.mrf.mxu1 }
 0x17f   : > { %657 = vst.msk [vmem:[%s170_s7 + $0x38] sm:$0xff] %vm649_vm4, %v646_v11  ;;  %v638_v14 = vadd.f32 %v761_v29, %v637_v13 }
 0x181   : > { %655 = vst.msk [vmem:[%s170_s7 + $0x28] sm:$0xff] %vm649_vm4, %v638_v14 }
 0x182 PF: > { %s13_s12 = sadd.s32 1, %s855_s12  }
 0x183   : > { %p10_p4 = scmp.ge.s32.totalorder %s13_s12, 4  }
 0x185   :  { %12 = sbr.rel (!%p10_p4) target bundleno = 1 (0x1), region = 63 }

</bundles_post_ra>
